<compile_context>
chip_gen: v7x
topology: tpu7x:2x2x1
jax: 0.10.0
libtpu: 0.0.40
codegen_flags: <defaults>
</compile_context>

<pallas_src>
import math

import jax
import jax.numpy as jnp
import numpy as np
from jax.experimental import pallas as pl
from jax.experimental.pallas import tpu as pltpu


def _make_kernel(B, B_pad, R, H, A):
    """Fused multi-head-attention kernel for static shapes."""
    HA = H * A

    def kernel(lhs_ref, wqk_ref, wo_ref, o_ref):
        # One MXU dot: fused Q/K projection for every head; biases enter via the
        # appended ones-column of lhs_aug hitting the last row of wqk_aug.
        proj = jnp.dot(lhs_ref[...], wqk_ref[...],
                       preferred_element_type=jnp.float32)       # (B_pad+B*R, 2*H*A)
        q = proj[:B, :HA]                                         # (B, H*A), 1/sqrt(A) folded in
        k = proj[B_pad:, HA:]                                     # (B*R, H*A)

        # Attention scores, built directly as a (B*H, R) slab (static tiny loops,
        # unrolled at trace time; no 3-D intermediates).
        rows = []
        for b in range(B):
            kb = k[b * R:(b + 1) * R, :]                          # (R, H*A)
            for h in range(H):
                qh = q[b:b + 1, h * A:(h + 1) * A]                # (1, A)
                kh = kb[:, h * A:(h + 1) * A]                     # (R, A)
                rows.append(jnp.einsum('qa,ra->qr', qh, kh,
                                       preferred_element_type=jnp.float32))  # (1, R)
        e = jnp.concatenate(rows, axis=0)                         # (B*H, R)

        # Numerically-stable softmax over the reviewer axis (lane reduce).
        m = jnp.max(e, axis=-1, keepdims=True)
        p = jnp.exp(e - m)
        # TODO(synk): pl.reciprocal(approx=True) would move this to the idle EUP
        # slot; kept exact so the 1e-5 tolerance is guaranteed without re-verification.
        inv = pl.reciprocal(jnp.sum(p, axis=-1, keepdims=True), approx=False)
        attn = p * inv                                            # (B*H, R) == z rows

        # Output projection; b_out already folded into wo_eff. 2-D store.
        o_ref[...] = jnp.dot(attn, wo_ref[...],
                             preferred_element_type=jnp.float32).astype(o_ref.dtype)
        # dropout(o): identity at inference time.

    return kernel


def multi_head_attention(sub, rev, params):
    """params = (wq_t[H,T,A], bq[H,1,A], wk_t[H,T,A], bk[H,1,A], wo_t[R,T], bo[1,T])."""
    wq_t, bq, wk_t, bk, wo_t, bo = params
    H, T, A = wq_t.shape
    B = sub.shape[0]
    R = rev.shape[1]
    assert R == H * T, (
        f"w_out requires reviewer count R ({R}) == heads * num_topics ({H * T})")
    HA = H * A
    B_pad = -(-B // 8) * 8      # sublane-align the reviewer rows inside proj

    # ---- trace-time packing: fold scale + biases, fuse Q/K weights, 3 operands ----
    scale = 1.0 / math.sqrt(A)
    wq_all = jnp.transpose(wq_t, (1, 0, 2)).reshape(T, HA) * scale        # (T, H*A)
    wk_all = jnp.transpose(wk_t, (1, 0, 2)).reshape(T, HA)                # (T, H*A)
    bq_all = bq.reshape(1, HA) * scale
    bk_all = bk.reshape(1, HA)
    wqk_aug = jnp.concatenate(
        [jnp.concatenate([wq_all, wk_all], axis=1),
         jnp.concatenate([bq_all, bk_all], axis=1)], axis=0)              # (T+1, 2*H*A)
    wo_eff = wo_t + bo        # fold output bias (softmax rows sum to 1)    (R, T)

    # Stack submitter (padded to a sublane multiple) over flattened reviewers and
    # append a ones column so the Q/K biases ride through the single matmul.
    rev_flat = rev.reshape(B * R, T)
    sub_pad = jnp.pad(sub, ((0, B_pad - B), (0, 0)))
    lhs = jnp.concatenate([sub_pad, rev_flat], axis=0)                    # (B_pad+B*R, T)
    lhs_aug = jnp.concatenate(
        [lhs, jnp.ones((lhs.shape[0], 1), lhs.dtype)], axis=1)            # (B_pad+B*R, T+1)

    vmem = pl.BlockSpec(memory_space=pltpu.MemorySpace.VMEM)
    # TODO(synk): for large B*R, add a leading batch grid axis marked "parallel"
    # (and set vmem_limit_bytes) so v7x (64 MiB VMEM, 2 TCs) stays resident and
    # uses both TensorCores; at B=2 any grid step is pure overhead, so grid-less.
    out2d = pl.pallas_call(
        _make_kernel(B, B_pad, R, H, A),
        out_shape=jax.ShapeDtypeStruct((B * H, T), jnp.float32),
        in_specs=[vmem, vmem, vmem],
        out_specs=vmem,
    )(lhs_aug, wqk_aug, wo_eff)
    return out2d.reshape(B, H, T)     # metadata-only reshape in the wrapper


def reference_forward(sub, rev, params):
    """Pure-JAX mirror of the PyTorch forward (dropout in eval mode)."""
    wq_t, bq, wk_t, bk, wo_t, bo = params
    H, _, A = wq_t.shape
    heads = []
    for h in range(H):
        Q = sub @ wq_t[h] + bq[h, 0]                                   # (B, A)
        K = jnp.einsum('brt,ta->bra', rev, wk_t[h]) + bk[h, 0]         # (B, R, A)
        e = jnp.einsum('ba,bra->br', Q, K) / math.sqrt(A)              # (B, R)
        heads.append(jax.nn.softmax(e, axis=-1))
    z = jnp.stack(heads, axis=1)                                       # (B, H, R)
    return z @ wo_t + bo                                               # (B, H, T)


def init_params(key, H, T, A):
    """Deterministic init mimicking nn.Linear (uniform +/- 1/sqrt(fan_in))."""
    R = H * T
    ks = jax.random.split(key, 6)
    lim_in = 1.0 / math.sqrt(T)
    lim_out = 1.0 / math.sqrt(R)
    wq_t = jax.random.uniform(ks[0], (H, T, A), jnp.float32, -lim_in, lim_in)
    bq = jax.random.uniform(ks[1], (H, 1, A), jnp.float32, -lim_in, lim_in)
    wk_t = jax.random.uniform(ks[2], (H, T, A), jnp.float32, -lim_in, lim_in)
    bk = jax.random.uniform(ks[3], (H, 1, A), jnp.float32, -lim_in, lim_in)
    wo_t = jax.random.uniform(ks[4], (R, T), jnp.float32, -lim_out, lim_out)
    bo = jax.random.uniform(ks[5], (1, T), jnp.float32, -lim_out, lim_out)
    return wq_t, bq, wk_t, bk, wo_t, bo


if __name__ == "__main__":
    # num_topics T=8, heads H=2, attention_matrix_size A=16,
    # reviewer count R must equal H*T=16 for w_out to apply.
    B, T, H, A = 2, 8, 2, 16
    R = H * T

    root = jax.random.PRNGKey(0)
    k_params, k_sub, k_rev = jax.random.split(root, 3)
    params = init_params(k_params, H, T, A)
    submitter_emb = jax.random.normal(k_sub, (B, T), jnp.float32)
    reviewer_emb = jax.random.normal(k_rev, (B, R, T), jnp.float32)

    out = multi_head_attention(submitter_emb, reviewer_emb, params)
    out = jax.block_until_ready(out)

    ref = reference_forward(submitter_emb, reviewer_emb, params)
    np.testing.assert_allclose(np.asarray(out), np.asarray(ref), rtol=1e-5, atol=1e-5)
    assert out.shape == (B, H, T)

    print("KERNEL_OK")
</pallas_src>

<mosaic_0001>
module attributes {stable_mosaic.version = 11 : i64} {
  func.func @kernel(%arg0: memref<40x9xf32, #tpu.memory_space<vmem>>, %arg1: memref<9x64xf32, #tpu.memory_space<vmem>>, %arg2: memref<16x8xf32, #tpu.memory_space<vmem>>, %arg3: memref<4x8xf32, #tpu.memory_space<vmem>>) attributes {dimension_semantics = [], scalar_prefetch = 0 : i64, scratch_operands = 0 : i64, tpu.core_type = #tpu.core_type<tc>} {
    %c0 = arith.constant 0 : index
    %c0_0 = arith.constant 0 : index
    %0 = vector.load %arg0[%c0, %c0_0] : memref<40x9xf32, #tpu.memory_space<vmem>>, vector<40x9xf32>
    %c0_1 = arith.constant 0 : index
    %c0_2 = arith.constant 0 : index
    %1 = vector.load %arg1[%c0_1, %c0_2] : memref<9x64xf32, #tpu.memory_space<vmem>>, vector<9x64xf32>
    %cst = arith.constant dense<0.000000e+00> : vector<40x64xf32>
    %2 = tpu.matmul %0, %1, %cst {dimension_numbers = #tpu.dot_dimension_numbers<[1], [0], [0], [1], [0, 0, 1, 1], [], []>} : vector<40x9xf32>, vector<9x64xf32>, vector<40x64xf32> -> vector<40x64xf32>
    %3 = vector.extract_strided_slice %2 {offsets = [0, 0], sizes = [2, 32], strides = [1, 1]} : vector<40x64xf32> to vector<2x32xf32>
    %4 = vector.extract_strided_slice %2 {offsets = [8, 32], sizes = [32, 32], strides = [1, 1]} : vector<40x64xf32> to vector<32x32xf32>
    %5 = vector.extract_strided_slice %4 {offsets = [0, 0], sizes = [16, 32], strides = [1, 1]} : vector<32x32xf32> to vector<16x32xf32>
    %6 = vector.extract_strided_slice %3 {offsets = [0, 0], sizes = [1, 16], strides = [1, 1]} : vector<2x32xf32> to vector<1x16xf32>
    %7 = vector.extract_strided_slice %5 {offsets = [0, 0], sizes = [16, 16], strides = [1, 1]} : vector<16x32xf32> to vector<16x16xf32>
    "tpu.trace_start"() <{level = 10 : i32, message = "qa,ra->qr"}> : () -> ()
    %cst_3 = arith.constant dense<0.000000e+00> : vector<1x16xf32>
    %8 = tpu.matmul %6, %7, %cst_3 {dimension_numbers = #tpu.dot_dimension_numbers<[1], [1], [0], [0], [0, 0, 1, 0], [], []>} : vector<1x16xf32>, vector<16x16xf32>, vector<1x16xf32> -> vector<1x16xf32>
    "tpu.trace_stop"() : () -> ()
    %9 = vector.extract_strided_slice %3 {offsets = [0, 16], sizes = [1, 16], strides = [1, 1]} : vector<2x32xf32> to vector<1x16xf32>
    %10 = vector.extract_strided_slice %5 {offsets = [0, 16], sizes = [16, 16], strides = [1, 1]} : vector<16x32xf32> to vector<16x16xf32>
    "tpu.trace_start"() <{level = 10 : i32, message = "qa,ra->qr"}> : () -> ()
    %cst_4 = arith.constant dense<0.000000e+00> : vector<1x16xf32>
    %11 = tpu.matmul %9, %10, %cst_4 {dimension_numbers = #tpu.dot_dimension_numbers<[1], [1], [0], [0], [0, 0, 1, 0], [], []>} : vector<1x16xf32>, vector<16x16xf32>, vector<1x16xf32> -> vector<1x16xf32>
    "tpu.trace_stop"() : () -> ()
    %12 = vector.extract_strided_slice %4 {offsets = [16, 0], sizes = [16, 32], strides = [1, 1]} : vector<32x32xf32> to vector<16x32xf32>
    %13 = vector.extract_strided_slice %3 {offsets = [1, 0], sizes = [1, 16], strides = [1, 1]} : vector<2x32xf32> to vector<1x16xf32>
    %14 = vector.extract_strided_slice %12 {offsets = [0, 0], sizes = [16, 16], strides = [1, 1]} : vector<16x32xf32> to vector<16x16xf32>
    "tpu.trace_start"() <{level = 10 : i32, message = "qa,ra->qr"}> : () -> ()
    %cst_5 = arith.constant dense<0.000000e+00> : vector<1x16xf32>
    %15 = tpu.matmul %13, %14, %cst_5 {dimension_numbers = #tpu.dot_dimension_numbers<[1], [1], [0], [0], [0, 0, 1, 0], [], []>} : vector<1x16xf32>, vector<16x16xf32>, vector<1x16xf32> -> vector<1x16xf32>
    "tpu.trace_stop"() : () -> ()
    %16 = vector.extract_strided_slice %3 {offsets = [1, 16], sizes = [1, 16], strides = [1, 1]} : vector<2x32xf32> to vector<1x16xf32>
    %17 = vector.extract_strided_slice %12 {offsets = [0, 16], sizes = [16, 16], strides = [1, 1]} : vector<16x32xf32> to vector<16x16xf32>
    "tpu.trace_start"() <{level = 10 : i32, message = "qa,ra->qr"}> : () -> ()
    %cst_6 = arith.constant dense<0.000000e+00> : vector<1x16xf32>
    %18 = tpu.matmul %16, %17, %cst_6 {dimension_numbers = #tpu.dot_dimension_numbers<[1], [1], [0], [0], [0, 0, 1, 0], [], []>} : vector<1x16xf32>, vector<16x16xf32>, vector<1x16xf32> -> vector<1x16xf32>
    "tpu.trace_stop"() : () -> ()
    %19 = tpu.concatenate %8, %11, %15, %18 in 0 : vector<1x16xf32>, vector<1x16xf32>, vector<1x16xf32>, vector<1x16xf32> -> vector<4x16xf32>
    %cst_7 = arith.constant dense<0xFF800000> : vector<4xf32>
    %20 = vector.multi_reduction <maximumf>, %19, %cst_7 [1] : vector<4x16xf32> to vector<4xf32>
    %21 = vector.shape_cast %20 : vector<4xf32> to vector<4x1xf32>
    %22 = vector.broadcast %21 : vector<4x1xf32> to vector<4x16xf32>
    %23 = arith.subf %19, %22 : vector<4x16xf32>
    %24 = math.exp %23 : vector<4x16xf32>
    %cst_8 = arith.constant dense<0.000000e+00> : vector<4xf32>
    %25 = vector.multi_reduction <add>, %24, %cst_8 [1] : vector<4x16xf32> to vector<4xf32>
    %26 = vector.shape_cast %25 : vector<4xf32> to vector<4x1xf32>
    %27 = tpu.reciprocal %26 : vector<4x1xf32> -> vector<4x1xf32>
    %28 = vector.broadcast %27 : vector<4x1xf32> to vector<4x16xf32>
    %29 = arith.mulf %24, %28 : vector<4x16xf32>
    %c0_9 = arith.constant 0 : index
    %c0_10 = arith.constant 0 : index
    %30 = vector.load %arg2[%c0_9, %c0_10] : memref<16x8xf32, #tpu.memory_space<vmem>>, vector<16x8xf32>
    %cst_11 = arith.constant dense<0.000000e+00> : vector<4x8xf32>
    %31 = tpu.matmul %29, %30, %cst_11 {dimension_numbers = #tpu.dot_dimension_numbers<[1], [0], [0], [1], [0, 0, 1, 1], [], []>} : vector<4x16xf32>, vector<16x8xf32>, vector<4x8xf32> -> vector<4x8xf32>
    %c0_12 = arith.constant 0 : index
    %c0_13 = arith.constant 0 : index
    %32 = vector.load %arg3[%c0_12, %c0_13] : memref<4x8xf32, #tpu.memory_space<vmem>>, vector<4x8xf32>
    tpu.vector_store %arg3[%c0_12, %c0_13], %31 {strides = array<i32>} : memref<4x8xf32, #tpu.memory_space<vmem>>, vector<4x8xf32>,
    return
  }
}

</mosaic_0001>

<bundles_post_ra>
// kernel: tpu_custom_call.1
= control target key start
LH: loop header
LB: loop body
LE: loop exit
PB: predicated region body
PF: predicated region fallthrough
CT: control target
= control target key end

     0   :  { %vm38_vm0 = vcmask 1040384   ;;  %v754_v2 = vmov 0.0|0.0   ;;  %vm755_vm1 = vmmov 1   ;;  %vm756_vm3 = vmmov 0   ;;  %s868_s0 = inlined_call_operand.vmem [shape: f32[40,9], index: 0, kind: input, shape index: {}]   ;;  %s869_s1 = inlined_call_operand.vmem [shape: f32[9,64], index: 1, kind: input, shape index: {}]   ;;  %s870_s2 = inlined_call_operand.vmem [shape: f32[16,8], index: 2, kind: input, shape index: {}]   ;;  %s871_s3 = inlined_call_operand.hbm [shape: f32[4,8], index: 3, kind: output, shape index: {}]  }
   0x1   :  { %v20_v0 = vld [vmem:[%s869_s1] sm:$0xff]  ;;  %v21_v1 = vld [vmem:[%s869_s1 + $0x8] sm:$0x1]  ;;  %675 = vmatprep.subr.bf16.mxu0 %v754_v2  ;;  %vm677_vm2 = vmpackc.low %vm38_vm0, %vm755_vm1  ;;  %679 = vmatprep.subr.bf16.mxu1 %v754_v2  ;;  %v757_v4 = vmov 0.0   ;;  %vm22_vm4 = vcmask 72704  }
   0x2   :  { %v676_v3 = vpack.c.bf16 %v21_v1, %v20_v0  ;;  %625 = vmatprep.mubr.msk.f32.mxu0 %vm756_vm3, %v757_v4  ;;  %644 = vmatprep.mubr.msk.f32.mxu1 %vm756_vm3, %v757_v4  ;;  %v15_v5 = vld [vmem:[%s868_s0] sm:$0xff] }
   0x4   :  { %678 = vmatpush3.bf16.msk.msra.mxu0 %vm677_vm2, %v676_v3 }
   0x5   :  { %8 = vsyncpa [#allocation3], 0  ;;  %687 = vmatprep.subr.bf16.mxu0 %v754_v2  ;;  %v16_v6 = vld [vmem:[%s868_s0 + $0x8] sm:$0xff]  ;;  %v17_v7 = vld [vmem:[%s868_s0 + $0x10] sm:$0xff]  ;;  %s758_s25 = smov 96   ;;  %s759_s26 = smov 80  }
   0x6   :  { %v18_v8 = vld [vmem:[%s868_s0 + $0x18] sm:$0xff]  ;;  %v19_v9 = vld [vmem:[%s868_s0 + $0x20] sm:$0xff]  ;;  %s760_s0 = smov 112   ;;  %vm138_vm5 = vcmask 130048   ;;  %vm473_vm7 = vcmask 1041408   ;;  %vm475_vm8 = vcmask 1042432  }
   0x7   :  { %626 = vmatmul.mubr.msk.f32.vlgmr.msra.gmra.mrb[0].mxu0 %vm22_vm4, %v15_v5  ;;  %vm823_vm6 = vmpackc.low %vm138_vm5, %vm138_vm5  ;;  %vm477_vm9 = vcmask 125952   ;;  %v489_v62 = vld [vmem:[%s870_s2] sm:$0xff]  ;;  %v490_v63 = vld [vmem:[%s870_s2 + $0x8] sm:$0xff]  ;;  %s761_s4 = smov [#allocation2]   ;;  %vm564_vm10 = vcmask 60416  }
   0x8   :  { %628 = vmatprep.mubr.msk.f32.mxu0 %vm756_vm3, %v757_v4  ;;  %v696_v0 = vpack.c.bf16 %v490_v63, %v489_v62  ;;  %s572_s5 = sshll.u32 %s761_s4, 4  ;;  %s573_s5 = int_to_ptr.vmem [resolvable:$true] %s572_s5 }
   0x9   :  { %s730_s6 = scalar_lea.vmem %s573_s5, 64  ;;  %p735_p1 = scmp.lt.s32.totalorder %s573_s5, %s573_s5 }
   0xa   :  { %p731_p0 = scmp.ne.s32.totalorder %s573_s5, %s730_s6  ;;  %p736_p2 = scmp.lt.s32.totalorder %s730_s6, %s730_s6 }
   0xb   :  { %629 = vmatmul.mubr.msk.f32.gmra.mrb[2].mxu0 %vm22_vm4, %v16_v6 }
   0xc   :  { %631 = vmatprep.mubr.msk.f32.mxu0 %vm756_vm3, %v757_v4  ;;  %p737_p3 = por %p736_p2, %p735_p1 }
   0xe   :  { %p738_p4 = pnand %p737_p3, %p731_p0 }
   0xf   :  { %632 = vmatmul.mubr.msk.f32.gmra.mrb[4].mxu0 %vm22_vm4, %v17_v7 }
  0x10   :  { %634 = vmatprep.mubr.msk.f32.mxu0 %vm756_vm3, %v757_v4 }
  0x13   :  { %635 = vmatmul.mubr.msk.f32.gmra.mrb[6].mxu0 %vm22_vm4, %v18_v8 }
  0x14   :  { %637 = vmatprep.mubr.msk.f32.mxu0 %vm756_vm3, %v757_v4 }
  0x17   :  { %638 = vmatmul.mubr.msk.f32.gmra.mrb[8].mxu0 %vm22_vm4, %v19_v9 }
  0x18   :  { %658 = vmatprep.mubr.msk.f32.mxu0 %vm756_vm3, %v757_v4 }
  0xda   :  { %v108_v10 = vpop.f32.mrb[0].mxu0 }
  0xdb   :  { %v627_v11 = vpop.f32.mrb[1].mxu0  ;;  %v298_v22 = vrot.slane %v108_v10, 1 }
  0xde   :  { %v113_v12 = vpop.f32.mrb[2].mxu0 }
  0xdf   :  { %v630_v13 = vpop.f32.mrb[3].mxu0 }
  0xe2   :  { %v118_v14 = vpop.f32.mrb[4].mxu0 }
  0xe3   :  { %v711_v15 = vpack.i.bf16 %v118_v14, %v113_v12  ;;  %v633_v16 = vpop.f32.mrb[5].mxu0 }
  0xe5   :  { %707 = vrot.lane.b32.xlu0 %v711_v15, %s758_s25 }
  0xe6   :  { %v123_v17 = vpop.f32.mrb[6].mxu0 }
  0xe7   :  { %v636_v18 = vpop.f32.mrb[7].mxu0 }
  0xe9   :  { %712 = vrot.lane.b32.xlu0 %v711_v15, %s759_s26 }
  0xea   :  { %v128_v19 = vpop.f32.mrb[8].mxu0 }
  0xeb   :  { %v721_v20 = vpack.i.bf16 %v128_v19, %v123_v17  ;;  %v639_v21 = vpop.f32.mrb[9].mxu0 }
  0xed   :  { %216 = vrot.lane.b32.xlu0 %v108_v10, %s760_s0  ;;  %717 = vrot.lane.b32.xlu1 %v721_v20, %s758_s25 }
  0xf1   :  { %722 = vrot.lane.b32.xlu1 %v721_v20, %s759_s26 }
  0xf5   :  { %381 = vrot.lane.b32.xlu1 %v298_v22, %s760_s0 }
 0x157   :  { %v708_v23 = vpop.permute.xlu0 %707 }
 0x158   :  { %v710_v24 = vunpack.i.h.bf16 %v708_v23  ;;  %v709_v25 = vunpack.i.l.bf16 %v708_v23 }
 0x15a   :  { %v680_v27 = vpack.c.bf16 %v710_v24, %v709_v25 }
 0x15b   :  { %v713_v28 = vpop.permute.xlu0 %712 }
 0x15c   :  { %682 = vmatpush3.bf16.xpose.msk.msra.mxu1 %vm823_vm6, %v680_v27  ;;  %v715_v29 = vunpack.i.h.bf16 %v713_v28  ;;  %v714_v30 = vunpack.i.l.bf16 %v713_v28 }
 0x15d   :  { %683 = vmatprep.subr.bf16.mxu1 %v754_v2 }
 0x15e   :  { %v684_v34 = vpack.c.bf16 %v715_v29, %v714_v30 }
 0x15f   :  { %v718_v31 = vpop.permute.xlu1 %717  ;;  %v217_v39 = vpop.permute.xlu0 %216 }
 0x160   :  { %v720_v32 = vunpack.i.h.bf16 %v718_v31  ;;  %v719_v33 = vunpack.i.l.bf16 %v718_v31 }
 0x162   :  { %v688_v35 = vpack.c.bf16 %v720_v32, %v719_v33 }
 0x163   :  { %645 = vmatmul.mubr.msk.f32.vlgmr.msra.gmra.mrb[0].mxu1 %vm138_vm5, %v108_v10  ;;  %v723_v36 = vpop.permute.xlu1 %722 }
 0x164   :  { %686 = vmatpush3.bf16.xpose.msk.msra.mxu1 %vm823_vm6, %v684_v34  ;;  %690 = vmatpush3.bf16.xpose.msk.msra.mxu0 %vm823_vm6, %v688_v35  ;;  %v725_v37 = vunpack.i.h.bf16 %v723_v36  ;;  %v724_v38 = vunpack.i.l.bf16 %v723_v36 }
 0x165   :  { %651 = vmatprep.mubr.msk.f32.mxu1 %vm756_vm3, %v757_v4  ;;  %691 = vmatprep.subr.bf16.mxu1 %v754_v2 }
 0x166   :  { %695 = vmatprep.subr.bf16.mxu0 %v754_v2  ;;  %v692_v40 = vpack.c.bf16 %v725_v37, %v724_v38 }
 0x167   :  { %v382_v41 = vpop.permute.xlu1 %381 }
 0x16b   :  { %652 = vmatmul.mubr.msk.f32.vlgmr.msra.gmra.mrb[2].mxu1 %vm138_vm5, %v217_v39  ;;  %659 = vmatmul.mubr.msk.f32.vlgmr.msra.gmra.mrb[10].mxu0 %vm138_vm5, %v298_v22 }
 0x16c   :  { %694 = vmatpush3.bf16.xpose.msk.msra.mxu1 %vm823_vm6, %v692_v40  ;;  %665 = vmatprep.mubr.msk.f32.mxu1 %vm756_vm3, %v757_v4 }
 0x16d   :  { %672 = vmatprep.mubr.msk.f32.mxu0 %vm756_vm3, %v757_v4  ;;  %697 = vmatpush3.bf16.msra.mxu0 %v696_v0 }
 0x173   :  { %666 = vmatmul.mubr.msk.f32.vlgmr.msra.gmra.mrb[4].mxu1 %vm138_vm5, %v382_v41 }
 0x236   :  { %v212_v42 = vpop.f32.mrb[0].mxu1 }
 0x237   :  { %v646_v43 = vpop.f32.mrb[1].mxu1 }
 0x23e   :  { %v294_v44 = vpop.f32.mrb[2].mxu1  ;;  %v377_v45 = vpop.f32.mrb[10].mxu0 }
 0x23f   :  { %v464_v46 = vrot.slane %v294_v44, 7  ;;  %v467_v47 = vrot.slane %v377_v45, 6  ;;  %v653_v48 = vpop.f32.mrb[3].mxu1  ;;  %v660_v49 = vpop.f32.mrb[11].mxu0 }
 0x241   :  { %v472_v50 = vsel %vm38_vm0, %v212_v42, %v464_v46 }
 0x242   :  { %v474_v51 = vsel %vm473_vm7, %v472_v50, %v467_v47 }
 0x246   :  { %v459_v52 = vpop.f32.mrb[4].mxu1 }
 0x247   :  { %v470_v53 = vrot.slane %v459_v52, 5  ;;  %v667_v54 = vpop.f32.mrb[5].mxu1 }
 0x249   :  { %v476_v55 = vsel %vm475_vm8, %v474_v51, %v470_v53 }
 0x24a   :  { %v478_v56 = vsel %vm477_vm9, %v476_v55, -inf }
 0x24b   :  { %479 = vmax.xlane.f32.xlu0 %v478_v56 }
 0x2d8   :  { %v480_v57 = vpop.xlane.xlu0 %479 }
 0x2d9   :  { %v481_v58 = vsub.f32 %v476_v55, %v480_v57 }
 0x2db   :  { %v482_v59 = vmul.f32 1.442695, %v481_v58 }
 0x2dd   :  { %726 = vpow2.f32 %v482_v59 }
 0x2e7   :  { %v727_v60 = vpop.eup %726 }
 0x2e8   :  { %v484_v61 = vsel %vm477_vm9, %v727_v60, 0.0 }
 0x2e9   :  { %485 = vadd.xlane.f32.xlu1 %v484_v61 }
 0x376   :  { %v486_v1 = vpop.xlane.xlu1 %485 }
 0x377   :  { %728 = vrcp.f32 %v486_v1 }
 0x381   :  { %v729_v2 = vpop.eup %728 }
 0x382   :  { %v488_v3 = vmul.f32 %v729_v2, %v727_v60 }
 0x384   :  { %673 = vmatmul.mubr.msk.f32.vlgmr.msra.gmra.mrb[12].mxu0 %vm138_vm5, %v488_v3 }
 0x457   :  { %v560_v4 = vpop.f32.mrb[12].mxu0 }
 0x458   :  { %565 = vst.msk [vmem:[#allocation2] sm:$0xf] %vm564_vm10, %v560_v4  ;;  %v674_v5 = vpop.f32.mrb[13].mxu0 }
 0x459   :  { %741 = shalt.err (!%p738_p4)
}
 0x45a   :  { %s742_s8 = scalar_lea.hbm %s871_s3, 64 }
 0x45b   :  { %p743_p5 = scmp.ne.s32.totalorder %s871_s3, %s742_s8  ;;  %p746_p6 = scmp.lt.u32.totalorder %s742_s8, %s871_s3 }
 0x45d   :  { %p748_p7 = pnand %p746_p6, %p743_p5 }
 0x45f   :  { %751 = shalt.err (!%p748_p7)
}
 0x460   :  { %575 = dma.vmem_to_hbm [thread:$0]  %s573_s5, 64, %s871_s3, [#allocation3]  }
 0x461   :  { %752 = dma.done.wait [#allocation3], 64  }
 0x462   :  { %753 = vsyncadd [#allocation3], 4294967232 }
 0x463   :  { %579 = vsyncpa [#allocation3], 1 }

</bundles_post_ra>
